<compile_context>
chip_gen: v6e
topology: v6e:2x2x1
jax: 0.10.0
libtpu: 0.0.40
codegen_flags: <defaults>
</compile_context>

<pallas_src>
import functools

import jax
import jax.numpy as jnp
from jax.experimental import pallas as pl
from jax.experimental.pallas import tpu as pltpu

LBASE = 192
L1_BASE = LBASE // 2 + 1   # 97
LPA = 96
L1_PA = LPA + 1            # 97
DIN = L1_BASE + L1_PA      # 194  (fused first-layer input width)
L2 = 16
L2_HALF = L2 // 2          # 8
L3 = 64
MAX_PLY = 60


def _round_up(x, m):
    return (x + m - 1) // m * m


def _layer_stacks_kernel(x_ref, idx_ref, w1_ref, b1_ref, w2_ref, b2_ref,
                         wout_ref, bout_ref, out_ref, *, count):
    # x:   (TB, DIN)   bf16   batch rows on sublanes (HBM layout)
    # idx: (1, 1, TB)  int32  bucket index, lane-major
    x = x_ref[...]
    idx = idx_ref[0]                                   # (1, TB)
    tb = x.shape[0]

    # ---- fused layer 1 (transposed): W1 @ x^T -> (16*count, TB) -------------
    # trans_b dot_general (same pattern as q @ k^T in flash attention).
    h_full = jax.lax.dot_general(
        w1_ref[...], x, (((1,), (1,)), ((), ())),
        preferred_element_type=jnp.float32) + b1_ref[...]

    # Hoisted per-bucket lane predicates, reused by every selection below.
    sels = [idx == i for i in range(count)]            # each (1, TB) bool

    # Per-column (per batch row) select of one 16-row stack block.
    # Row order inside a block is [base(8) | pa(8)] == torch.cat([l1x_base, l1x_pa]).
    l1x = h_full[0:L2, :]
    for i in range(1, count):
        l1x = jnp.where(sels[i], h_full[i * L2:(i + 1) * L2, :], l1x)

    l1cat = jnp.clip(
        jnp.concatenate([l1x * l1x * (127.0 / 128.0), l1x], axis=0),
        0.0, 1.0)                                      # (2*L2, TB)

    # ---- layer 2: (L3*count, 2*L2) @ (2*L2, TB) ------------------------------
    l2_full = jnp.dot(w2_ref[...], l1cat.astype(jnp.bfloat16),
                      preferred_element_type=jnp.float32) + b2_ref[...]  # (L3*count, TB)
    l2x = l2_full[0:L3, :]
    for i in range(1, count):
        l2x = jnp.where(sels[i], l2_full[i * L3:(i + 1) * L3, :], l2x)
    l2x = jnp.clip(l2x, 0.0, 1.0)

    # ---- output head: (count, L3) @ (L3, TB), then per-column row select ----
    out_full = jnp.dot(wout_ref[...], l2x.astype(jnp.bfloat16),
                       preferred_element_type=jnp.float32) + bout_ref[...]  # (count, TB)
    onehot = jax.lax.broadcasted_iota(jnp.int32, (count, tb), 0) == idx
    out_row = jnp.sum(jnp.where(onehot, out_full, 0.0),
                      axis=0, keepdims=True)            # (1, TB)  lane-dense
    out_ref[0] = out_row


def layer_stacks_forward(params, x_base, x_pa, ply, *, count, tile_b=1024):
    """params: dict with PyTorch-layout weights (out, in) and biases (out,)."""
    bucket_size = MAX_PLY // count
    batch = x_base.shape[0]

    # --- tile / grid selection ----------------------------------------------
    # Large tiles amortize per-step overhead; cap so batches > 8 rows keep
    # >= 2 grid steps (v7x: two TensorCores share the "parallel" axis).
    eff_tile = max(8, min(tile_b, _round_up(-(-batch // 2), 8)))
    bp = _round_up(batch, eff_tile)
    num_tiles = bp // eff_tile
    pad = bp - batch

    # --- activation / index glue --------------------------------------------
    idx = jnp.clip(ply.reshape(-1).astype(jnp.int32) // bucket_size, 0, count - 1)
    x = jnp.concatenate([x_base, x_pa], axis=1).astype(jnp.bfloat16)    # (batch, DIN)
    if pad:
        x = jnp.pad(x, ((0, pad), (0, 0)))
        idx = jnp.pad(idx, ((0, pad),))
    idx_row = idx.reshape(num_tiles, 1, eff_tile)                       # lane-major per tile

    # --- weight glue: fused block-diagonal layer 1, PyTorch (out, in) rows ---
    w1b = params["l1_base_w"].reshape(count, L2_HALF, L1_BASE)
    w1pa = params["l1_pa_w"].reshape(count, L2_HALF, L1_PA)
    w1 = jnp.concatenate([
        jnp.concatenate([w1b, jnp.zeros((count, L2_HALF, L1_PA), w1b.dtype)], axis=2),
        jnp.concatenate([jnp.zeros((count, L2_HALF, L1_BASE), w1pa.dtype), w1pa], axis=2),
    ], axis=1).reshape(count * L2, DIN).astype(jnp.bfloat16)            # (16*count, DIN)
    b1 = jnp.concatenate([params["l1_base_b"].reshape(count, L2_HALF),
                          params["l1_pa_b"].reshape(count, L2_HALF)],
                         axis=1).reshape(count * L2, 1).astype(jnp.float32)
    w2 = params["l2_w"].astype(jnp.bfloat16)                            # (L3*count, 2*L2)
    b2 = params["l2_b"].reshape(-1, 1).astype(jnp.float32)              # (L3*count, 1)
    wout = params["output_w"].astype(jnp.bfloat16)                      # (count, L3)
    bout = params["output_b"].reshape(-1, 1).astype(jnp.float32)        # (count, 1)

    kernel = functools.partial(_layer_stacks_kernel, count=count)
    full = lambda a: pl.BlockSpec(a.shape, lambda i: (0,) * a.ndim)

    # If profiling shows exposed input DMA at very large tiles, the next knob
    # is pipeline_mode=pl.Buffered(3) on the x BlockSpec.
    out3 = pl.pallas_call(
        kernel,
        out_shape=jax.ShapeDtypeStruct((num_tiles, 1, eff_tile), jnp.float32),
        grid=(num_tiles,),
        in_specs=[
            pl.BlockSpec((eff_tile, DIN), lambda i: (i, 0)),
            pl.BlockSpec((1, 1, eff_tile), lambda i: (i, 0, 0)),
            full(w1), full(b1), full(w2), full(b2), full(wout), full(bout),
        ],
        out_specs=pl.BlockSpec((1, 1, eff_tile), lambda i: (i, 0, 0)),
        compiler_params=pltpu.CompilerParams(
            dimension_semantics=("parallel",)),
    )(x, idx_row, w1, b1, w2, b2, wout, bout)

    return out3.reshape(-1)[:batch].reshape(batch, 1)


def init_layer_stacks_params(key, count):
    """Deterministic init mirroring the module: all `count` stacks identical,
    output bias zero, PyTorch-Linear-style uniform(-1/sqrt(fan_in), 1/sqrt(fan_in))."""
    ks = jax.random.split(key, 7)

    def lin(kw, kb, fan_in, fan_out):
        bound = 1.0 / jnp.sqrt(float(fan_in))
        w = jax.random.uniform(kw, (fan_out, fan_in), jnp.float32, -bound, bound)
        b = jax.random.uniform(kb, (fan_out,), jnp.float32, -bound, bound)
        return w, b

    w1b, b1b = lin(ks[0], ks[1], L1_BASE, L2_HALF)
    w1pa, b1pa = lin(ks[2], ks[3], L1_PA, L2_HALF)
    w2, b2 = lin(ks[4], ks[5], L2 * 2, L3)
    wout, _ = lin(ks[6], ks[6], L3, 1)

    return {
        "l1_base_w": jnp.tile(w1b, (count, 1)),        # (L2_HALF*count, L1_BASE)
        "l1_base_b": jnp.tile(b1b, (count,)),
        "l1_pa_w": jnp.tile(w1pa, (count, 1)),         # (L2_HALF*count, L1_PA)
        "l1_pa_b": jnp.tile(b1pa, (count,)),
        "l2_w": jnp.tile(w2, (count, 1)),              # (L3*count, 2*L2)
        "l2_b": jnp.tile(b2, (count,)),
        "output_w": jnp.tile(wout, (count, 1)),        # (count, L3)
        "output_b": jnp.zeros((count,), jnp.float32),  # filled with 0.0 in _init_layers
    }


def layer_stacks_reference(params, x_base, x_pa, ply, *, count):
    """Pure-JAX f32 reference replicating the PyTorch forward (for validation)."""
    bucket_size = MAX_PLY // count
    b = x_base.shape[0]
    idx = ply.reshape(-1).astype(jnp.int32) // bucket_size
    rows = jnp.arange(b)

    h_base = (x_base @ params["l1_base_w"].T + params["l1_base_b"]).reshape(b, count, L2_HALF)
    h_base = h_base[rows, idx]
    h_pa = (x_pa @ params["l1_pa_w"].T + params["l1_pa_b"]).reshape(b, count, L2_HALF)
    h_pa = h_pa[rows, idx]
    l1x = jnp.concatenate([h_base, h_pa], axis=1)
    l1cat = jnp.clip(jnp.concatenate([l1x ** 2 * (127 / 128), l1x], axis=1), 0.0, 1.0)
    l2x = (l1cat @ params["l2_w"].T + params["l2_b"]).reshape(b, count, L3)[rows, idx]
    l2x = jnp.clip(l2x, 0.0, 1.0)
    out = (l2x @ params["output_w"].T + params["output_b"]).reshape(b, count, 1)[rows, idx]
    return out


if __name__ == "__main__":
    count = 4
    batch = 24   # small demo; exercises 2 grid steps + batch padding

    key = jax.random.PRNGKey(0)
    k_params, k_xb, k_xpa, k_ply = jax.random.split(key, 4)

    params = init_layer_stacks_params(k_params, count)
    x_base = jax.random.uniform(k_xb, (batch, L1_BASE), jnp.float32)
    x_pa = jax.random.uniform(k_xpa, (batch, L1_PA), jnp.float32)
    ply = jax.random.randint(k_ply, (batch,), 0, MAX_PLY, dtype=jnp.int32)

    out = layer_stacks_forward(params, x_base, x_pa, ply, count=count)
    out = jax.block_until_ready(out)

    ref = layer_stacks_reference(params, x_base, x_pa, ply, count=count)
    assert out.shape == (batch, 1)
    # bf16 matmul inputs (per perf review) => loosened tolerance vs pure-f32 ref.
    assert jnp.allclose(out, ref, atol=3e-2, rtol=3e-2), (out, ref)

    print("KERNEL_OK")
</pallas_src>

<mosaic_0001>
module attributes {stable_mosaic.version = 11 : i64} {
  func.func @_layer_stacks_kernel(%arg0: i32, %arg1: memref<16x194xbf16, #tpu.memory_space<vmem>>, %arg2: memref<1x1x16xi32, #tpu.memory_space<vmem>>, %arg3: memref<64x194xbf16, #tpu.memory_space<vmem>>, %arg4: memref<64x1xf32, #tpu.memory_space<vmem>>, %arg5: memref<256x32xbf16, #tpu.memory_space<vmem>>, %arg6: memref<256x1xf32, #tpu.memory_space<vmem>>, %arg7: memref<4x64xbf16, #tpu.memory_space<vmem>>, %arg8: memref<4x1xf32, #tpu.memory_space<vmem>>, %arg9: memref<1x1x16xf32, #tpu.memory_space<vmem>>) attributes {dimension_semantics = [#tpu.dimension_semantics<parallel>], iteration_bounds = array<i64: 2>, scalar_prefetch = 0 : i64, scratch_operands = 0 : i64, tpu.core_type = #tpu.core_type<tc>, window_params = [{transform_indices = @transform_0, window_bounds = array<i64: 16, 194>}, {transform_indices = @transform_1, window_bounds = array<i64: 1, 1, 16>}, {pipeline_mode = #tpu.pipeline_mode<synchronous>, transform_indices = @transform_2, window_bounds = array<i64: 64, 194>}, {pipeline_mode = #tpu.pipeline_mode<synchronous>, transform_indices = @transform_3, window_bounds = array<i64: 64, 1>}, {pipeline_mode = #tpu.pipeline_mode<synchronous>, transform_indices = @transform_4, window_bounds = array<i64: 256, 32>}, {pipeline_mode = #tpu.pipeline_mode<synchronous>, transform_indices = @transform_5, window_bounds = array<i64: 256, 1>}, {pipeline_mode = #tpu.pipeline_mode<synchronous>, transform_indices = @transform_6, window_bounds = array<i64: 4, 64>}, {pipeline_mode = #tpu.pipeline_mode<synchronous>, transform_indices = @transform_7, window_bounds = array<i64: 4, 1>}, {transform_indices = @transform_8, window_bounds = array<i64: 1, 1, 16>}]} {
    %c0 = arith.constant 0 : index
    %c0_0 = arith.constant 0 : index
    %0 = vector.load %arg1[%c0, %c0_0] : memref<16x194xbf16, #tpu.memory_space<vmem>>, vector<16x194xbf16>
    %c0_1 = arith.constant 0 : index
    %c0_2 = arith.constant 0 : index
    %c0_3 = arith.constant 0 : index
    %1 = vector.load %arg2[%c0_1, %c0_2, %c0_3] : memref<1x1x16xi32, #tpu.memory_space<vmem>>, vector<1x1x16xi32>
    %2 = vector.shape_cast %1 : vector<1x1x16xi32> to vector<1x16xi32>
    %c0_4 = arith.constant 0 : index
    %c0_5 = arith.constant 0 : index
    %3 = vector.load %arg3[%c0_4, %c0_5] : memref<64x194xbf16, #tpu.memory_space<vmem>>, vector<64x194xbf16>
    %cst = arith.constant dense<0.000000e+00> : vector<64x16xf32>
    %4 = tpu.matmul %3, %0, %cst {dimension_numbers = #tpu.dot_dimension_numbers<[1], [1], [0], [0], [0, 0, 1, 0], [], []>} : vector<64x194xbf16>, vector<16x194xbf16>, vector<64x16xf32> -> vector<64x16xf32>
    %c0_6 = arith.constant 0 : index
    %c0_7 = arith.constant 0 : index
    %5 = vector.load %arg4[%c0_6, %c0_7] : memref<64x1xf32, #tpu.memory_space<vmem>>, vector<64x1xf32>
    %6 = vector.broadcast %5 : vector<64x1xf32> to vector<64x16xf32>
    %7 = arith.addf %4, %6 : vector<64x16xf32>
    %c1_i32 = arith.constant 1 : i32
    %8 = vector.broadcast %c1_i32 : i32 to vector<1x16xi32>
    %9 = arith.cmpi eq, %2, %8 : vector<1x16xi32>
    %c2_i32 = arith.constant 2 : i32
    %10 = vector.broadcast %c2_i32 : i32 to vector<1x16xi32>
    %11 = arith.cmpi eq, %2, %10 : vector<1x16xi32>
    %c3_i32 = arith.constant 3 : i32
    %12 = vector.broadcast %c3_i32 : i32 to vector<1x16xi32>
    %13 = arith.cmpi eq, %2, %12 : vector<1x16xi32>
    %14 = vector.extract_strided_slice %7 {offsets = [0, 0], sizes = [16, 16], strides = [1, 1]} : vector<64x16xf32> to vector<16x16xf32>
    %15 = vector.extract_strided_slice %7 {offsets = [16, 0], sizes = [16, 16], strides = [1, 1]} : vector<64x16xf32> to vector<16x16xf32>
    %16 = vector.shape_cast %9 : vector<1x16xi1> to vector<1x16xi1>
    %17 = vector.broadcast %16 : vector<1x16xi1> to vector<16x16xi1>
    %18 = arith.select %17, %15, %14 : vector<16x16xi1>, vector<16x16xf32>
    %19 = vector.extract_strided_slice %7 {offsets = [32, 0], sizes = [16, 16], strides = [1, 1]} : vector<64x16xf32> to vector<16x16xf32>
    %20 = vector.shape_cast %11 : vector<1x16xi1> to vector<1x16xi1>
    %21 = vector.broadcast %20 : vector<1x16xi1> to vector<16x16xi1>
    %22 = arith.select %21, %19, %18 : vector<16x16xi1>, vector<16x16xf32>
    %23 = vector.extract_strided_slice %7 {offsets = [48, 0], sizes = [16, 16], strides = [1, 1]} : vector<64x16xf32> to vector<16x16xf32>
    %24 = vector.shape_cast %13 : vector<1x16xi1> to vector<1x16xi1>
    %25 = vector.broadcast %24 : vector<1x16xi1> to vector<16x16xi1>
    %26 = arith.select %25, %23, %22 : vector<16x16xi1>, vector<16x16xf32>
    %27 = arith.mulf %26, %26 : vector<16x16xf32>
    %cst_8 = arith.constant 0.9921875 : f32
    %28 = vector.broadcast %cst_8 : f32 to vector<16x16xf32>
    %29 = arith.mulf %27, %28 : vector<16x16xf32>
    %30 = tpu.concatenate %29, %26 in 0 : vector<16x16xf32>, vector<16x16xf32> -> vector<32x16xf32>
    %cst_9 = arith.constant 0.000000e+00 : f32
    %cst_10 = arith.constant 1.000000e+00 : f32
    %31 = vector.broadcast %cst_9 : f32 to vector<32x16xf32>
    %32 = arith.maximumf %31, %30 : vector<32x16xf32>
    %33 = vector.broadcast %cst_10 : f32 to vector<32x16xf32>
    %34 = arith.minimumf %33, %32 : vector<32x16xf32>
    %c0_11 = arith.constant 0 : index
    %c0_12 = arith.constant 0 : index
    %35 = vector.load %arg5[%c0_11, %c0_12] : memref<256x32xbf16, #tpu.memory_space<vmem>>, vector<256x32xbf16>
    %36 = arith.truncf %34 : vector<32x16xf32> to vector<32x16xbf16>
    %cst_13 = arith.constant dense<0.000000e+00> : vector<256x16xf32>
    %37 = tpu.matmul %35, %36, %cst_13 {dimension_numbers = #tpu.dot_dimension_numbers<[1], [0], [0], [1], [0, 0, 1, 1], [], []>} : vector<256x32xbf16>, vector<32x16xbf16>, vector<256x16xf32> -> vector<256x16xf32>
    %c0_14 = arith.constant 0 : index
    %c0_15 = arith.constant 0 : index
    %38 = vector.load %arg6[%c0_14, %c0_15] : memref<256x1xf32, #tpu.memory_space<vmem>>, vector<256x1xf32>
    %39 = vector.broadcast %38 : vector<256x1xf32> to vector<256x16xf32>
    %40 = arith.addf %37, %39 : vector<256x16xf32>
    %41 = vector.extract_strided_slice %40 {offsets = [0, 0], sizes = [64, 16], strides = [1, 1]} : vector<256x16xf32> to vector<64x16xf32>
    %42 = vector.extract_strided_slice %40 {offsets = [64, 0], sizes = [64, 16], strides = [1, 1]} : vector<256x16xf32> to vector<64x16xf32>
    %43 = vector.shape_cast %9 : vector<1x16xi1> to vector<1x16xi1>
    %44 = vector.broadcast %43 : vector<1x16xi1> to vector<64x16xi1>
    %45 = arith.select %44, %42, %41 : vector<64x16xi1>, vector<64x16xf32>
    %46 = vector.extract_strided_slice %40 {offsets = [128, 0], sizes = [64, 16], strides = [1, 1]} : vector<256x16xf32> to vector<64x16xf32>
    %47 = vector.shape_cast %11 : vector<1x16xi1> to vector<1x16xi1>
    %48 = vector.broadcast %47 : vector<1x16xi1> to vector<64x16xi1>
    %49 = arith.select %48, %46, %45 : vector<64x16xi1>, vector<64x16xf32>
    %50 = vector.extract_strided_slice %40 {offsets = [192, 0], sizes = [64, 16], strides = [1, 1]} : vector<256x16xf32> to vector<64x16xf32>
    %51 = vector.shape_cast %13 : vector<1x16xi1> to vector<1x16xi1>
    %52 = vector.broadcast %51 : vector<1x16xi1> to vector<64x16xi1>
    %53 = arith.select %52, %50, %49 : vector<64x16xi1>, vector<64x16xf32>
    %cst_16 = arith.constant 0.000000e+00 : f32
    %cst_17 = arith.constant 1.000000e+00 : f32
    %54 = vector.broadcast %cst_16 : f32 to vector<64x16xf32>
    %55 = arith.maximumf %54, %53 : vector<64x16xf32>
    %56 = vector.broadcast %cst_17 : f32 to vector<64x16xf32>
    %57 = arith.minimumf %56, %55 : vector<64x16xf32>
    %c0_18 = arith.constant 0 : index
    %c0_19 = arith.constant 0 : index
    %58 = vector.load %arg7[%c0_18, %c0_19] : memref<4x64xbf16, #tpu.memory_space<vmem>>, vector<4x64xbf16>
    %59 = arith.truncf %57 : vector<64x16xf32> to vector<64x16xbf16>
    %cst_20 = arith.constant dense<0.000000e+00> : vector<4x16xf32>
    %60 = tpu.matmul %58, %59, %cst_20 {dimension_numbers = #tpu.dot_dimension_numbers<[1], [0], [0], [1], [0, 0, 1, 1], [], []>} : vector<4x64xbf16>, vector<64x16xbf16>, vector<4x16xf32> -> vector<4x16xf32>
    %c0_21 = arith.constant 0 : index
    %c0_22 = arith.constant 0 : index
    %61 = vector.load %arg8[%c0_21, %c0_22] : memref<4x1xf32, #tpu.memory_space<vmem>>, vector<4x1xf32>
    %62 = vector.broadcast %61 : vector<4x1xf32> to vector<4x16xf32>
    %63 = arith.addf %60, %62 : vector<4x16xf32>
    %64 = tpu.iota {dimensions = array<i32: 0>} : vector<4x16xi32>
    %65 = vector.broadcast %2 : vector<1x16xi32> to vector<4x16xi32>
    %66 = arith.cmpi eq, %64, %65 : vector<4x16xi32>
    %cst_23 = arith.constant 0.000000e+00 : f32
    %67 = vector.broadcast %cst_23 : f32 to vector<4x16xf32>
    %68 = arith.select %66, %63, %67 : vector<4x16xi1>, vector<4x16xf32>
    %cst_24 = arith.constant dense<0.000000e+00> : vector<16xf32>
    %69 = vector.multi_reduction <add>, %68, %cst_24 [0] : vector<4x16xf32> to vector<16xf32>
    %70 = vector.shape_cast %69 : vector<16xf32> to vector<1x16xf32>
    %c0_25 = arith.constant 0 : index
    %c0_26 = arith.constant 0 : index
    %c0_27 = arith.constant 0 : index
    %71 = vector.load %arg9[%c0_25, %c0_26, %c0_27] : memref<1x1x16xf32, #tpu.memory_space<vmem>>, vector<1x1x16xf32>
    %72 = vector.shape_cast %71 : vector<1x1x16xf32> to vector<1x16xf32>
    %73 = vector.shape_cast %70 : vector<1x16xf32> to vector<1x1x16xf32>
    tpu.vector_store %arg9[%c0_25, %c0_26, %c0_27], %73 {strides = array<i32>} : memref<1x1x16xf32, #tpu.memory_space<vmem>>, vector<1x1x16xf32>,
    return
  }
  func.func @transform_0(%arg0: i32) -> (i32, i32) {
    %c0_i32 = arith.constant 0 : i32
    %c0_i32_0 = arith.constant 0 : i32
    return %arg0, %c0_i32 : i32, i32
  }
  func.func @transform_1(%arg0: i32) -> (i32, i32, i32) {
    %c0_i32 = arith.constant 0 : i32
    %c0_i32_0 = arith.constant 0 : i32
    %c0_i32_1 = arith.constant 0 : i32
    return %arg0, %c0_i32, %c0_i32_0 : i32, i32, i32
  }
  func.func @transform_2(%arg0: i32) -> (i32, i32) {
    %c0_i32 = arith.constant 0 : i32
    %c0_i32_0 = arith.constant 0 : i32
    %c0_i32_1 = arith.constant 0 : i32
    return %c0_i32, %c0_i32_0 : i32, i32
  }
  func.func @transform_3(%arg0: i32) -> (i32, i32) {
    %c0_i32 = arith.constant 0 : i32
    %c0_i32_0 = arith.constant 0 : i32
    %c0_i32_1 = arith.constant 0 : i32
    return %c0_i32, %c0_i32_0 : i32, i32
  }
  func.func @transform_4(%arg0: i32) -> (i32, i32) {
    %c0_i32 = arith.constant 0 : i32
    %c0_i32_0 = arith.constant 0 : i32
    %c0_i32_1 = arith.constant 0 : i32
    return %c0_i32, %c0_i32_0 : i32, i32
  }
  func.func @transform_5(%arg0: i32) -> (i32, i32) {
    %c0_i32 = arith.constant 0 : i32
    %c0_i32_0 = arith.constant 0 : i32
    %c0_i32_1 = arith.constant 0 : i32
    return %c0_i32, %c0_i32_0 : i32, i32
  }
  func.func @transform_6(%arg0: i32) -> (i32, i32) {
    %c0_i32 = arith.constant 0 : i32
    %c0_i32_0 = arith.constant 0 : i32
    %c0_i32_1 = arith.constant 0 : i32
    return %c0_i32, %c0_i32_0 : i32, i32
  }
  func.func @transform_7(%arg0: i32) -> (i32, i32) {
    %c0_i32 = arith.constant 0 : i32
    %c0_i32_0 = arith.constant 0 : i32
    %c0_i32_1 = arith.constant 0 : i32
    return %c0_i32, %c0_i32_0 : i32, i32
  }
  func.func @transform_8(%arg0: i32) -> (i32, i32, i32) {
    %c0_i32 = arith.constant 0 : i32
    %c0_i32_0 = arith.constant 0 : i32
    %c0_i32_1 = arith.constant 0 : i32
    return %arg0, %c0_i32, %c0_i32_0 : i32, i32, i32
  }
}

</mosaic_0001>

<bundles_post_ra>
// kernel: tpu_custom_call.1
= control target key start
LH: loop header
LB: loop body
LE: loop exit
PB: predicated region body
PF: predicated region fallthrough
CT: control target
= control target key end

     0   :  { %13 = vsyncpa [#allocation3], 0  ;;  %s2043_s0 = inlined_call_operand.vmem [shape: bf16[32,194], index: 0, kind: input, shape index: {}]   ;;  %s2044_s1 = inlined_call_operand.vmem [shape: s32[2,1,16], index: 1, kind: input, shape index: {}]   ;;  %s2045_s2 = inlined_call_operand.vmem [shape: bf16[64,194], index: 2, kind: input, shape index: {}]   ;;  %s2046_s3 = inlined_call_operand.vmem [shape: f32[64,1], index: 3, kind: input, shape index: {}]   ;;  %s2047_s4 = inlined_call_operand.vmem [shape: bf16[256,32], index: 4, kind: input, shape index: {}]   ;;  %s2048_s5 = inlined_call_operand.vmem [shape: f32[256,1], index: 5, kind: input, shape index: {}]   ;;  %s2049_s6 = inlined_call_operand.vmem [shape: bf16[4,64], index: 6, kind: input, shape index: {}]   ;;  %s2050_s7 = inlined_call_operand.vmem [shape: f32[4,1], index: 7, kind: input, shape index: {}]   ;;  %s2051_s8 = inlined_call_operand.hbm [shape: f32[2,1,16], index: 8, kind: output, shape index: {}]  }
   0x1   :  { %15 = vsyncpa [#allocation3 + $0x1], 0  ;;  %s1569_s27 = smov 0   ;;  %s1571_s28 = smov 0  }
   0x2   :  { %s1573_s29 = smov 0   ;;  %s1575_s30 = smov 0  }
   0x3 LB: > { %s1590_s9 = sadd.s32 4294967295, %s1518_s30   ;;  %s1253_s10 = sadd.s32 4294967294, %s1518_s30   ;;  %s1518_s30 = sphi %s1575_s30, %s2089_s30   ;;  %s1514_s29 = sphi %s1573_s29, %s2088_s29   ;;  %s1510_s28 = sphi %s1571_s28, %s2087_s28   ;;  %s1506_s27 = sphi %s1569_s27, %s2086_s27  }
   0x4   : > { %s1594_s11 = sadd.s32 1, %s1518_s30   ;;  %s206_s12 = sadd.s32 1, %s1514_s29 }
   0x5   : > { %s203_s13 = ssub.s32 %s1518_s30, %s1594_s11  ;;  %p216_p0 = scmp.ne.s32.totalorder %s1514_s29, %s1510_s28 }
   0x6   : > { %p204_p1 = scmp.eq.s32.totalorder %s203_s13, 0  ;;  %p217_p2 = scmp.eq.s32.totalorder %s1590_s9, 1 }
   0x7   : > { %p222_p3 = scmp.ne.s32.totalorder %s1510_s28, %s1506_s27  ;;  %p223_p4 = scmp.eq.s32.totalorder %s1253_s10, 1 }
   0x8   : > { %s1605_s14 = scalar_select %p204_p1, %s1514_s29, %s206_s12  }
   0x9   : > { %p1607_p5 = por %p217_p2, %p216_p0  ;;  %p1611_p6 = por %p223_p4, %p222_p3 }
   0xa   : > { %p1256_p7 = scmp.ge.s32.totalorder %s1518_s30, 1  ;;  %p275_p8 = scmp.lt.s32.totalorder %s1518_s30, 3 }
   0xc   : > { %p276_p9 = pnand %p1256_p7, %p275_p8 }
   0xe   : > { %279 = sbr.rel (%p276_p9) target bundleno = 771 (0x303), region = 52 }
  0x13   : > { %s1257_s17 = sshll.u32 %s1590_s9, 1  ;;  %v1432_v0 = vld [vmem:[%s2045_s2 + $0x4] ss:$8 sps:$4 sm:$0xff]   ;;  %vm427_vm0 = vcmask 539648   ;;  %v1520_v2 = vmov 0   ;;  %v336_v3 = vld [vmem:[%s2046_s3 + $0x10] sm:$0xff]  ;;  %v512_v56 = vlaneseq }
  0x14   : > { %p313_p10 = scmp.lt.s32.totalorder %s1257_s17, 3  ;;  %v334_v1 = vld [vmem:[%s2046_s3] sm:$0xff]  ;;  %1425 = vset.pattern.permute.xlu0 %v1520_v2  ;;  %1426 = vset.pattern.permute.xlu1 %v1520_v2  ;;  %v335_v4 = vld [vmem:[%s2046_s3 + $0x8] sm:$0xff]  ;;  %v337_v5 = vld [vmem:[%s2046_s3 + $0x18] sm:$0xff]  ;;  %vm853_vm1 = vcmask 261120   ;;  %p319_p11 = scmp.lt.s32.totalorder %s1590_s9, 1 }
  0x15   : > { %1271 = vmatprep.mubr.msk.bf16.mxu0 %vm427_vm0, %v1432_v0  ;;  %344 = vperm.xlu0 %1425, %v334_v1   ;;  %v338_v8 = vld [vmem:[%s2046_s3 + $0x20] sm:$0xff]  ;;  %v339_v9 = vld [vmem:[%s2046_s3 + $0x28] sm:$0xff]  ;;  %v340_v10 = vld [vmem:[%s2046_s3 + $0x30] sm:$0xff]  ;;  %v1786_v61 = vshrl.u32 %v512_v56, 7  ;;  %vm1522_vm8 = vmmov 0   ;;  %vm1114_vm9 = vcmask 523264  }
  0x16   : > { %s2091_s17 = smov (!%p313_p10, %s1257_s17), 3  ;;  %354 = vperm.xlu1 %1426, %v336_v3   ;;  %v1430_v11 = vld [vmem:[%s2045_s2] ss:$8 sps:$4 sm:$0xff]   ;;  %v341_v12 = vld [vmem:[%s2046_s3 + $0x38] sm:$0xff]  ;;  %v587_v14 = vld [vmem:[%s2048_s5 + $0x30] sm:$0xff]  ;;  %vm1166_vm11 = vcmask 125952  }
  0x17   : > { %s1311_s26 = sshll.u32 %s2091_s17, 3  ;;  %v1433_v13 = vld [vmem:[%s2045_s2 + $0x14] ss:$8 sps:$4 sm:$0xff]   ;;  %v1435_v16 = vld [vmem:[%s2045_s2 + $0x10] ss:$8 sps:$4 sm:$0xff]   ;;  %v585_v26 = vld [vmem:[%s2048_s5 + $0x20] sm:$0xff] }
  0x18   : > { %s317_s19 = scalar_lea.vmem %s2043_s0, %s1311_s26  ;;  %v588_v15 = vld [vmem:[%s2048_s5 + $0x38] sm:$0xff]  ;;  %v1436_v17 = vld [vmem:[%s2045_s2 + $0x24] ss:$8 sps:$4 sm:$0xff]   ;;  %v595_v18 = vld [vmem:[%s2048_s5 + $0x70] sm:$0xff]  ;;  %2060 = vst [vmem:[#allocation6_spill] sm:$0xff] %v1786_v61  ;;  %v1791_v3 = vsub.s32 0, %v1786_v61 }
  0x19   : > { %v1427_v6 = vld [vmem:[%s317_s19 + $0x4] ss:$8 sps:$4 sm:$0xff]   ;;  %349 = vperm.xlu0 %1425, %v335_v4   ;;  %v1429_v7 = vld [vmem:[%s317_s19] ss:$8 sps:$4 sm:$0xff]   ;;  %v596_v19 = vld [vmem:[%s2048_s5 + $0x78] sm:$0xff]  ;;  %s320_s19 = scalar_select %p319_p11, %s1590_s9, 1 }
  0x1a   : > { %359 = vperm.xlu1 %1426, %v337_v5   ;;  %1270 = vmatprep.subr.msk.bf16.mxu0 %vm427_vm0, %v1427_v6  ;;  %v603_v20 = vld [vmem:[%s2048_s5 + $0xb0] sm:$0xff]  ;;  %v604_v21 = vld [vmem:[%s2048_s5 + $0xb8] sm:$0xff]  ;;  %v1438_v23 = vld [vmem:[%s2045_s2 + $0x20] ss:$8 sps:$4 sm:$0xff]   ;;  %2061 = vst [vmem:[#allocation7_spill] sm:$0xff] %v1791_v3  ;;  %s310_s12 = sand.u32 1, %s1510_s28  }
  0x1b   : > { %458 = vmatpush1.bf16.xpose.msra.mxu0 %v1429_v7  ;;  %v611_v22 = vld [vmem:[%s2048_s5 + $0xf0] sm:$0xff]  ;;  %v612_v24 = vld [vmem:[%s2048_s5 + $0xf8] sm:$0xff]  ;;  %v586_v27 = vld [vmem:[%s2048_s5 + $0x28] sm:$0xff]  ;;  %s321_s22 = scalar_lea.vmem %s2044_s1, %s320_s19  ;;  %s1308_s13 = sshll.u32 %s1590_s9, 4  ;;  %vm1174_vm12 = vcmask 122880  }
  0x1c   : > { %v1439_v25 = vld [vmem:[%s2045_s2 + $0x34] ss:$8 sps:$4 sm:$0xff]   ;;  %v593_v28 = vld [vmem:[%s2048_s5 + $0x60] sm:$0xff]  ;;  %v1441_v29 = vld [vmem:[%s2045_s2 + $0x30] ss:$8 sps:$4 sm:$0xff]   ;;  %s311_s18 = scalar_lea.vmem [#allocation2], %s310_s12 }
  0x1d   : > { %364 = vperm.xlu0 %1425, %v338_v8   ;;  %v594_v30 = vld [vmem:[%s2048_s5 + $0x68] sm:$0xff]  ;;  %v601_v31 = vld [vmem:[%s2048_s5 + $0xa0] sm:$0xff]  ;;  %v583_v35 = vld [vmem:[%s2048_s5 + $0x10] sm:$0xff]  ;;  %s1189_s19 = sshll.u32 %s311_s18, 4  ;;  %s1177_s17 = scalar_lea.sflag [#allocation3], %s310_s12  ;;  %s1190_s19 = int_to_ptr.vmem [resolvable:$true] %s1189_s19 }
  0x1e   : > { %369 = vperm.xlu1 %1426, %v339_v9   ;;  %v602_v32 = vld [vmem:[%s2048_s5 + $0xa8] sm:$0xff]  ;;  %v609_v33 = vld [vmem:[%s2048_s5 + $0xe0] sm:$0xff]  ;;  %v584_v36 = vld [vmem:[%s2048_s5 + $0x18] sm:$0xff]  ;;  %s1458_s23 = scalar_lea.vmem %s1190_s19, 16  ;;  %s1523_s24 = smov [#allocation2]  }
  0x1f   : > { %v610_v34 = vld [vmem:[%s2048_s5 + $0xe8] sm:$0xff]  ;;  %v591_v37 = vld [vmem:[%s2048_s5 + $0x50] sm:$0xff]  ;;  %v592_v38 = vld [vmem:[%s2048_s5 + $0x58] sm:$0xff]  ;;  %p1459_p12 = scmp.ne.s32.totalorder %s1190_s19, %s1458_s23  ;;  %s1462_s25 = sshll.u32 %s1523_s24, 4  ;;  %s1463_s25 = int_to_ptr.vmem [resolvable:$false] %s1462_s25 }
  0x20   : > { %v599_v39 = vld [vmem:[%s2048_s5 + $0x90] sm:$0xff]  ;;  %v600_v40 = vld [vmem:[%s2048_s5 + $0x98] sm:$0xff]  ;;  %v581_v43 = vld [vmem:[%s2048_s5] sm:$0xff]  ;;  %s1464_s9 = scalar_lea.vmem %s1463_s25, 32  ;;  %p1465_p1 = scmp.lt.s32.totalorder %s1190_s19, %s1463_s25 }
  0x21   : > { %374 = vperm.xlu0 %1425, %v340_v10   ;;  %v607_v41 = vld [vmem:[%s2048_s5 + $0xd0] sm:$0xff]  ;;  %v608_v42 = vld [vmem:[%s2048_s5 + $0xd8] sm:$0xff]  ;;  %v582_v44 = vld [vmem:[%s2048_s5 + $0x8] sm:$0xff]  ;;  %p1460_p13 = pnand %p1459_p12, %p1607_p5  ;;  %p1466_p2 = scmp.lt.s32.totalorder %s1464_s9, %s1458_s23 }
  0x22   : > { %379 = vperm.xlu1 %1426, %v341_v12   ;;  %476 = vmatmul.mubr.bf16.vlgmr.msra.gmra.mxu0 %v1430_v11  ;;  %v589_v45 = vld [vmem:[%s2048_s5 + $0x40] sm:$0xff]  ;;  %v590_v46 = vld [vmem:[%s2048_s5 + $0x48] sm:$0xff]  ;;  %v1445_v56 = vld [vmem:[%s2047_s4 + $0x18] sm:$0xff]  }
  0x23   : > { %1272 = vmatprep.mubr.msk.bf16.mxu0 %vm427_vm0, %v1433_v13  ;;  %v597_v47 = vld [vmem:[%s2048_s5 + $0x80] sm:$0xff]  ;;  %v598_v48 = vld [vmem:[%s2048_s5 + $0x88] sm:$0xff]  ;;  %p1461_p0 = pneg %p1460_p13  ;;  %p1467_p3 = por %p1466_p2, %p1465_p1 }
  0x24   : > { %v605_v49 = vld [vmem:[%s2048_s5 + $0xc0] sm:$0xff]  ;;  %v606_v50 = vld [vmem:[%s2048_s5 + $0xc8] sm:$0xff] }
  0x25   : > { %645 = vperm.xlu0 %1425, %v587_v14   ;;  %v1108_v51 = vld [vmem:[%s2050_s7] sm:$0xf]  ;;  %p1468_p4 = pnand %p1467_p3, %p1461_p0 }
  0x26   : > { %650 = vperm.xlu1 %1426, %v588_v15   ;;  %v1442_v52 = vld [vmem:[%s2047_s4] sm:$0xff]  }
  0x27   : > { %1339 = vmatprep.mubr.msk.bf16.mxu1 %vm853_vm1, %v1442_v52  ;;  %v1784_v60 = vld [vmem:[%s321_s22] sm:$0x1]  ;;  %s1187_s22 = scalar_lea.hbm %s2051_s8, %s1308_s13 }
  0x28   : > { %2059 = vst [vmem:[#allocation5_spill] sm:$0xff] %v1784_v60  ;;  %vm508_vm2 = vcmp.eq.s32.totalorder %v1784_v60, 1  ;;  %vm509_vm3 = vcmp.eq.s32.totalorder %v1784_v60, 2  ;;  %vm510_vm4 = vcmp.eq.s32.totalorder %v1784_v60, 3 }
  0x29   : > { %685 = vperm.xlu0 %1425, %v595_v18   ;;  %v511_v5 = vsel %vm508_vm2, 1, %v1520_v2  ;;  %v519_v6 = vsel %vm509_vm3, 1, %v1520_v2  ;;  %v527_v9 = vsel %vm510_vm4, 1, %v1520_v2 }
  0x2a   : > { %690 = vperm.xlu1 %1426, %v596_v19   ;;  %484 = vmatmul.mubr.bf16.gmra.mxu0 %v1435_v16  ;;  %v515_v10 = vrot.slane %v511_v5, %v1791_v3  ;;  %v523_v13 = vrot.slane %v519_v6, %v1791_v3  ;;  %v531_v14 = vrot.slane %v527_v9, %v1791_v3  ;;  %v1454_v5 = vld [vmem:[%s2047_s4 + $0x60] sm:$0xff]   ;;  %v1455_v6 = vld [vmem:[%s2047_s4 + $0x68] sm:$0xff]   ;;  %v2052_v9 = vmov 0.0  }
  0x2b   : > { %1273 = vmatprep.mubr.msk.bf16.mxu0 %vm427_vm0, %v1436_v17  ;;  %1371 = vmatprep.subr.bf16.mxu0 %v2052_v9 }
  0x2c   : > { %vm1800_vm5 = vcmp.eq.s32.totalorder %v515_v10, 1  ;;  %vm1804_vm6 = vcmp.eq.s32.totalorder %v523_v13, 1  ;;  %vm1808_vm7 = vcmp.eq.s32.totalorder %v531_v14, 1 }
  0x2d   : > { %725 = vperm.xlu0 %1425, %v603_v20  }
  0x2e   : > { %730 = vperm.xlu1 %1426, %v604_v21   ;;  %v2082_v21 = vmov 0.0  }
  0x31   : > { %765 = vperm.xlu0 %1425, %v611_v22   ;;  %v1103_v22 = vld [vmem:[%s2049_s6] sm:$0x3] }
  0x32   : > { %770 = vperm.xlu1 %1426, %v612_v24   ;;  %492 = vmatmul.mubr.bf16.gmra.mxu0 %v1438_v23 }
  0x33   : > { %1274 = vmatprep.mubr.msk.bf16.mxu0 %vm427_vm0, %v1439_v25 }
  0x35   : > { %635 = vperm.xlu0 %1425, %v585_v26  }
  0x36   : > { %640 = vperm.xlu1 %1426, %v586_v27  }
  0x39   : > { %675 = vperm.xlu0 %1425, %v593_v28  }
  0x3a   : > { %680 = vperm.xlu1 %1426, %v594_v30   ;;  %500 = vmatmul.mubr.bf16.gmra.mxu0 %v1441_v29 }
  0x3b   : > { %1379 = vmatprep.mubr.msk.bf16.mxu0 %vm1522_vm8, %v2052_v9 }
  0x3d   : > { %715 = vperm.xlu0 %1425, %v601_v31  }
  0x3e   : > { %720 = vperm.xlu1 %1426, %v602_v32  }
  0x41   : > { %755 = vperm.xlu0 %1425, %v609_v33  }
  0x42   : > { %760 = vperm.xlu1 %1426, %v610_v34  }
  0x45   : > { %625 = vperm.xlu0 %1425, %v583_v35  }
  0x46   : > { %630 = vperm.xlu1 %1426, %v584_v36  }
  0x49   : > { %665 = vperm.xlu0 %1425, %v591_v37  }
  0x4a   : > { %670 = vperm.xlu1 %1426, %v592_v38  }
  0x4d   : > { %705 = vperm.xlu0 %1425, %v599_v39  }
  0x4e   : > { %710 = vperm.xlu1 %1426, %v600_v40  }
  0x51   : > { %745 = vperm.xlu0 %1425, %v607_v41  }
  0x52   : > { %750 = vperm.xlu1 %1426, %v608_v42  }
  0x55   : > { %615 = vperm.xlu0 %1425, %v581_v43  }
  0x56   : > { %620 = vperm.xlu1 %1426, %v582_v44  }
  0x59   : > { %655 = vperm.xlu0 %1425, %v589_v45  }
  0x5a   : > { %660 = vperm.xlu1 %1426, %v590_v46  }
  0x5d   : > { %695 = vperm.xlu0 %1425, %v597_v47  }
  0x5e   : > { %700 = vperm.xlu1 %1426, %v598_v48  }
  0x61   : > { %735 = vperm.xlu0 %1425, %v605_v49  }
  0x62   : > { %740 = vperm.xlu1 %1426, %v606_v50  }
  0x65   : > { %1111 = vperm.xlu0 %1425, %v1108_v51  }
  0x90   : > { %v345_v57 = vpop.permute.xlu0 %344 }
  0x91   : > { %v355_v62 = vpop.permute.xlu1 %354 }
  0x94   : > { %v350_v0 = vpop.permute.xlu0 %349 }
  0x95   : > { %v360_v7 = vpop.permute.xlu1 %359 }
  0x98   : > { %v365_v11 = vpop.permute.xlu0 %364 }
  0x99   : > { %v370_v18 = vpop.permute.xlu1 %369 }
  0x9c   : > { %v375_v23 = vpop.permute.xlu0 %374 }
  0x9d   : > { %v380_v33 = vpop.permute.xlu1 %379 }
  0xa0   : > { %v1886_v10 = vpop.permute.xlu0 %645 }
  0xe2   : > { %v477_v53 = vpop.f32.mrf.mxu0 }
  0xe3   : > { %v478_v2 = vadd.f32 %v477_v53, %v345_v57  ;;  %v1446_v57 = vld [vmem:[%s2047_s4 + $0x20] sm:$0xff]  }
  0xe4   : > { %v479_v54 = vpop.f32.mrf.mxu0 }
  0xe5   : > { %v1443_v54 = vld [vmem:[%s2047_s4 + $0x8] sm:$0xff]  }
  0xe6   : > { %v480_v55 = vpop.f32.mrf.mxu0 }
  0xe7   : > { %v481_v31 = vadd.f32 %v480_v55, %v350_v0  ;;  %v1444_v55 = vld [vmem:[%s2047_s4 + $0x10] sm:$0xff]   ;;  %v1451_v0 = vld [vmem:[%s2047_s4 + $0x48] sm:$0xff]  }
  0xe8   : > { %v482_v58 = vpop.f32.mrf.mxu0 }
  0xe9   : > { %v1447_v58 = vld [vmem:[%s2047_s4 + $0x28] sm:$0xff]  }
  0xea   : > { %v485_v59 = vpop.f32.mrf.mxu0 }
  0xeb   : > { %v486_v16 = vadd.f32 %v485_v59, %v355_v62  ;;  %v1448_v59 = vld [vmem:[%s2047_s4 + $0x30] sm:$0xff]   ;;  %v1449_v62 = vld [vmem:[%s2047_s4 + $0x38] sm:$0xff]  }
  0xec   : > { %v487_v63 = vpop.f32.mrf.mxu0 }
  0xed   : > { %v517_v25 = vsel %vm1800_vm5, %v486_v16, %v478_v2  ;;  %v1450_v63 = vld [vmem:[%s2047_s4 + $0x40] sm:$0xff]  }
  0xee   : > { %v488_v1 = vpop.f32.mrf.mxu0 }
  0xef   : > { %v489_v26 = vadd.f32 %v488_v1, %v360_v7  ;;  %v1452_v1 = vld [vmem:[%s2047_s4 + $0x50] sm:$0xff]  }
  0xf0   : > { %v490_v4 = vpop.f32.mrf.mxu0  ;;  %v1456_v7 = vld [vmem:[%s2047_s4 + $0x70] sm:$0xff]  }
  0xf1   : > { %v518_v36 = vsel %vm1800_vm5, %v489_v26, %v481_v31  ;;  %v1453_v4 = vld [vmem:[%s2047_s4 + $0x58] sm:$0xff]  }
  0xf2   : > { %v493_v8 = vpop.f32.mrf.mxu0 }
  0xf3   : > { %v494_v19 = vadd.f32 %v493_v8, %v365_v11  ;;  %v1457_v8 = vld [vmem:[%s2047_s4 + $0x78] sm:$0xff]   ;;  %v1888_v11 = vpop.permute.xlu1 %650 }
  0xf4   : > { %v495_v12 = vpop.f32.mrf.mxu0 }
  0xf5   : > { %v525_v28 = vsel %vm1804_vm6, %v494_v19, %v517_v25  ;;  %v1890_v12 = vpop.permute.xlu0 %685 }
  0xf6   : > { %v496_v15 = vpop.f32.mrf.mxu0 }
  0xf7   : > { %v497_v29 = vadd.f32 %v496_v15, %v370_v18  ;;  %v1892_v13 = vpop.permute.xlu1 %690 }
  0xf8   : > { %v498_v20 = vpop.f32.mrf.mxu0 }
  0xf9   : > { %v526_v38 = vsel %vm1804_vm6, %v497_v29, %v518_v36  ;;  %v1894_v14 = vpop.permute.xlu0 %725 }
  0xfa   : > { %v501_v24 = vpop.f32.mrf.mxu0 }
  0xfb   : > { %v502_v27 = vadd.f32 %v501_v24, %v375_v23  ;;  %v1896_v15 = vpop.permute.xlu1 %730 }
  0xfc   : > { %v503_v30 = vpop.f32.mrf.mxu0 }
  0xfd   : > { %v533_v32 = vsel %vm1808_vm7, %v502_v27, %v525_v28  ;;  %v1898_v16 = vpop.permute.xlu0 %765 }
  0xfe   : > { %v504_v34 = vpop.f32.mrf.mxu0  ;;  %v535_v35 = vmul.f32 %v533_v32, %v533_v32  ;;  %v541_v41 = vmax.f32 %v533_v32, 0.0 }
  0xff   : > { %v505_v37 = vadd.f32 %v504_v34, %v380_v33  ;;  %v1900_v18 = vpop.permute.xlu1 %770 }
 0x100   : > { %v506_v39 = vpop.f32.mrf.mxu0  ;;  %v537_v40 = vmul.f32 0.9921875, %v535_v35  ;;  %v545_v46 = vmin.f32 %v541_v41, 1.0  ;;  %2068 = vst [vmem:[#allocation8_spill] sm:$0xff] %v1900_v18 }
 0x101   : > { %v534_v42 = vsel %vm1808_vm7, %v505_v37, %v526_v38  ;;  %v1902_v19 = vpop.permute.xlu0 %635 }
 0x102   : > { %v536_v43 = vmul.f32 %v534_v42, %v534_v42  ;;  %v542_v44 = vmax.f32 %v534_v42, 0.0  ;;  %v539_v48 = vmax.f32 %v537_v40, 0.0 }
 0x103   : > { %v1904_v20 = vpop.permute.xlu1 %640 }
 0x104   : > { %v538_v45 = vmul.f32 0.9921875, %v536_v43  ;;  %v546_v47 = vmin.f32 %v542_v44, 1.0  ;;  %v543_v51 = vmin.f32 %v539_v48, 1.0 }
 0x105   : > { %v1906_v2 = vpop.permute.xlu0 %675 }
 0x106   : > { %v580_v49 = vpack.c.bf16 %v546_v47, %v545_v46  ;;  %v540_v50 = vmax.f32 %v538_v45, 0.0 }
 0x107   : > { %v1908_v23 = vpop.permute.xlu1 %680 }
 0x108   : > { %1335 = vmatprep.subr.bf16.mxu1 %v580_v49  ;;  %v544_v52 = vmin.f32 %v540_v50, 1.0 }
 0x109   : > { %1336 = vmatpush3.bf16.msra.mxu1 %v580_v49  ;;  %v1910_v24 = vpop.permute.xlu0 %715 }
 0x10a   : > { %v579_v53 = vpack.c.bf16 %v544_v52, %v543_v51 }
 0x10b   : > { %v1912_v25 = vpop.permute.xlu1 %720 }
 0x10c   : > { %1337 = vmatprep.subr.bf16.mxu1 %v579_v53  ;;  %2069 = vst [vmem:[#allocation9_spill] sm:$0xff] %v1912_v25 }
 0x10d   : > { %1338 = vmatpush3.bf16.msra.mxu1 %v579_v53  ;;  %v1914_v27 = vpop.permute.xlu0 %755 }
 0x10f   : > { %v1916_v30 = vpop.permute.xlu1 %760 }
 0x110   : > { %1340 = vmatmul.mubr.msk.bf16.vlgmr.msra.gmra.mxu1 %vm853_vm1, %v1443_v54  ;;  %2070 = vst [vmem:[#allocation10_spill] sm:$0xff] %v1916_v30 }
 0x111   : > { %1343 = vmatprep.mubr.msk.bf16.mxu1 %vm853_vm1, %v1444_v55  ;;  %v626_v32 = vpop.permute.xlu0 %625 }
 0x113   : > { %v631_v35 = vpop.permute.xlu1 %630 }
 0x115   : > { %v666_v37 = vpop.permute.xlu0 %665 }
 0x117   : > { %v671_v40 = vpop.permute.xlu1 %670 }
 0x118   : > { %1344 = vmatmul.mubr.msk.bf16.gmra.mxu1 %vm853_vm1, %v1445_v56 }
 0x119   : > { %1347 = vmatprep.mubr.msk.bf16.mxu1 %vm853_vm1, %v1446_v57  ;;  %v1918_v42 = vpop.permute.xlu0 %705 }
 0x11a   : > { %2071 = vst [vmem:[#allocation11_spill] sm:$0xff] %v1918_v42 }
 0x11b   : > { %v1920_v45 = vpop.permute.xlu1 %710 }
 0x11d   : > { %v1922_v47 = vpop.permute.xlu0 %745 }
 0x11e   : > { %2072 = vst [vmem:[#allocation12_spill] sm:$0xff] %v1922_v47 }
 0x11f   : > { %v1924_v50 = vpop.permute.xlu1 %750 }
 0x120   : > { %1348 = vmatmul.mubr.msk.bf16.gmra.mxu1 %vm853_vm1, %v1447_v58  ;;  %2073 = vst [vmem:[#allocation13_spill] sm:$0xff] %v1924_v50 }
 0x121   : > { %1351 = vmatprep.mubr.msk.bf16.mxu1 %vm853_vm1, %v1448_v59  ;;  %v616_v52 = vpop.permute.xlu0 %615 }
 0x123   : > { %v621_v55 = vpop.permute.xlu1 %620 }
 0x125   : > { %v656_v57 = vpop.permute.xlu0 %655 }
 0x128   : > { %1352 = vmatmul.mubr.msk.bf16.gmra.mxu1 %vm853_vm1, %v1449_v62  ;;  %v661_v62 = vpop.permute.xlu1 %660 }
 0x129   : > { %1355 = vmatprep.mubr.msk.bf16.mxu1 %vm853_vm1, %v1450_v63 }
 0x130   : > { %1356 = vmatmul.mubr.msk.bf16.gmra.mxu1 %vm853_vm1, %v1451_v0  ;;  %v696_v0 = vpop.permute.xlu0 %695 }
 0x131   : > { %1359 = vmatprep.mubr.msk.bf16.mxu1 %vm853_vm1, %v1452_v1 }
 0x134   : > { %v736_v61 = vpop.permute.xlu0 %735 }
 0x138   : > { %1360 = vmatmul.mubr.msk.bf16.gmra.mxu1 %vm853_vm1, %v1453_v4 }
 0x139   : > { %1363 = vmatprep.mubr.msk.bf16.mxu1 %vm853_vm1, %v1454_v5 }
 0x140   : > { %1364 = vmatmul.mubr.msk.bf16.gmra.mxu1 %vm853_vm1, %v1455_v6  ;;  %v701_v6 = vpop.permute.xlu1 %700 }
 0x141   : > { %1367 = vmatprep.mubr.msk.bf16.mxu1 %vm853_vm1, %v1456_v7 }
 0x148   : > { %1368 = vmatmul.mubr.msk.bf16.gmra.mxu1 %vm853_vm1, %v1457_v8 }
 0x1d0   : > { %v1341_v26 = vpop.f32.mrf.mxu1 }
 0x1d1   : > { %v1928_v3 = vadd.f32 %v1341_v26, %v626_v32  ;;  %v741_v32 = vpop.permute.xlu1 %740 }
 0x1d2   : > { %v936_v28 = vpop.f32.mrf.mxu1 }
 0x1d3   : > { %v937_v9 = vadd.f32 %v936_v28, %v616_v52  ;;  %v2078_v52 = vld [vmem:[#allocation13_spill] sm:$0xff] }
 0x1d4   : > { %v1342_v29 = vpop.f32.mrf.mxu1 }
 0x1d5   : > { %v948_v50 = vadd.f32 %v1342_v29, %v631_v35 }
 0x1d6   : > { %v939_v31 = vpop.f32.mrf.mxu1 }
 0x1d8   : > { %v1345_v33 = vpop.f32.mrf.mxu1 }
 0x1da   : > { %v952_v34 = vpop.f32.mrf.mxu1 }
 0x1dc   : > { %v1346_v36 = vpop.f32.mrf.mxu1 }
 0x1de   : > { %v955_v38 = vpop.f32.mrf.mxu1 }
 0x1e0   : > { %v1349_v39 = vpop.f32.mrf.mxu1 }
 0x1e1   : > { %v977_v35 = vadd.f32 %v1349_v39, %v666_v37 }
 0x1e2   : > { %v968_v41 = vpop.f32.mrf.mxu1 }
 0x1e3   : > { %v969_v5 = vadd.f32 %v968_v41, %v656_v57  ;;  %v940_v57 = vadd.f32 %v939_v31, %v621_v55  ;;  %v2079_v55 = vld [vmem:[#allocation8_spill] sm:$0xff] }
 0x1e4   : > { %v1350_v43 = vpop.f32.mrf.mxu1 }
 0x1e5   : > { %v1063_v30 = vsel %vm1800_vm5, %v969_v5, %v937_v9  ;;  %v953_v9 = vadd.f32 %v952_v34, %v1902_v19  ;;  %v2081_v5 = vld [vmem:[#allocation10_spill] sm:$0xff] }
 0x1e6   : > { %v971_v44 = vpop.f32.mrf.mxu1 }
 0x1e7   : > { %v972_v47 = vadd.f32 %v971_v44, %v661_v62  ;;  %v2075_v44 = vld [vmem:[#allocation9_spill] sm:$0xff] }
 0x1e8   : > { %v1353_v46 = vpop.f32.mrf.mxu1 }
 0x1e9   : > { %v993_v28 = vadd.f32 %v1353_v46, %v1890_v12  ;;  %v1064_v31 = vsel %vm1800_vm5, %v972_v47, %v940_v57 }
 0x1ea   : > { %v984_v48 = vpop.f32.mrf.mxu1 }
 0x1ec   : > { %v1354_v49 = vpop.f32.mrf.mxu1 }
 0x1ed   : > { %v996_v12 = vadd.f32 %v1354_v49, %v1892_v13  ;;  %v2076_v49 = vld [vmem:[#allocation11_spill] sm:$0xff] }
 0x1ee   : > { %v987_v51 = vpop.f32.mrf.mxu1 }
 0x1ef   : > { %v988_v34 = vadd.f32 %v987_v51, %v1908_v23 }
 0x1f0   : > { %v1926_v53 = vpop.f32.mrf.mxu1 }
 0x1f1   : > { %2074 = vst [vmem:[#allocation14_spill] sm:$0xff] %v1926_v53  ;;  %v980_v53 = vadd.f32 %v1350_v43, %v671_v40 }
 0x1f2   : > { %v1000_v54 = vpop.f32.mrf.mxu1 }
 0x1f3   : > { %v1001_v7 = vadd.f32 %v1000_v54, %v696_v0  ;;  %v961_v54 = vadd.f32 %v1345_v33, %v1886_v10  ;;  %v985_v10 = vadd.f32 %v984_v48, %v1906_v2 }
 0x1f4   : > { %v1358_v56 = vpop.f32.mrf.mxu1 }
 0x1f5   : > { %v1071_v42 = vsel %vm1804_vm6, %v1001_v7, %v1063_v30  ;;  %v1067_v40 = vsel %vm1800_vm5, %v985_v10, %v953_v9  ;;  %v1012_v43 = vadd.f32 %v1358_v56, %v1920_v45  ;;  %v1065_v7 = vsel %vm1800_vm5, %v977_v35, %v1928_v3 }
 0x1f6   : > { %v1003_v58 = vpop.f32.mrf.mxu1 }
 0x1f7   : > { %v1004_v25 = vadd.f32 %v1003_v58, %v701_v6 }
 0x1f8   : > { %v1361_v59 = vpop.f32.mrf.mxu1 }
 0x1f9   : > { %v1025_v29 = vadd.f32 %v1361_v59, %v1894_v14  ;;  %v1069_v14 = vsel %vm1800_vm5, %v993_v28, %v961_v54 }
 0x1fa   : > { %v1016_v63 = vpop.f32.mrf.mxu1 }
 0x1fb   : > { %v1017_v37 = vadd.f32 %v1016_v63, %v1910_v24  ;;  %v2080_v63 = vld [vmem:[#allocation12_spill] sm:$0xff] }
 0x1fc   : > { %v1362_v1 = vpop.f32.mrf.mxu1 }
 0x1fe   : > { %v1019_v4 = vpop.f32.mrf.mxu1 }
 0x1ff   : > { %v1020_v46 = vadd.f32 %v1019_v4, %v2075_v44 }
 0x200   : > { %v1365_v8 = vpop.f32.mrf.mxu1 }
 0x201   : > { %v1041_v0 = vadd.f32 %v1365_v8, %v2080_v63 }
 0x202   : > { %v1032_v60 = vpop.f32.mrf.mxu1 }
 0x203   : > { %v1033_v18 = vadd.f32 %v1032_v60, %v736_v61  ;;  %v964_v60 = vadd.f32 %v1346_v36, %v1888_v11  ;;  %v956_v61 = vadd.f32 %v955_v38, %v1904_v20  ;;  %v1072_v11 = vsel %vm1804_vm6, %v1004_v25, %v1064_v31 }
 0x204   : > { %v1366_v41 = vpop.f32.mrf.mxu1  ;;  %v1077_v36 = vsel %vm1804_vm6, %v1025_v29, %v1069_v14  ;;  %v1028_v38 = vadd.f32 %v1362_v1, %v1896_v15  ;;  %v1112_v14 = vpop.permute.xlu0 %1111 }
 0x205   : > { %v1079_v26 = vsel %vm1808_vm7, %v1033_v18, %v1071_v42  ;;  %v1066_v18 = vsel %vm1800_vm5, %v980_v53, %v948_v50  ;;  %v1070_v23 = vsel %vm1800_vm5, %v996_v12, %v964_v60  ;;  %v1068_v48 = vsel %vm1800_vm5, %v988_v34, %v956_v61  ;;  %v2077_v50 = vld [vmem:[#allocation14_spill] sm:$0xff] }
 0x206   : > { %v1035_v30 = vpop.f32.mrf.mxu1  ;;  %v1087_v19 = vmax.f32 %v1079_v26, 0.0  ;;  %v1009_v51 = vadd.f32 %v2077_v50, %v2076_v49  ;;  %v1044_v53 = vadd.f32 %v1366_v41, %v2078_v52  ;;  %v1078_v45 = vsel %vm1804_vm6, %v1028_v38, %v1070_v23 }
 0x207   : > { %v1036_v33 = vadd.f32 %v1035_v30, %v741_v32  ;;  %v1074_v41 = vsel %vm1804_vm6, %v1012_v43, %v1066_v18  ;;  %v1076_v57 = vsel %vm1804_vm6, %v1020_v46, %v1068_v48 }
 0x208   : > { %v1369_v20 = vpop.f32.mrf.mxu1  ;;  %v1095_v24 = vmin.f32 %v1087_v19, 1.0  ;;  %v1073_v8 = vsel %vm1804_vm6, %v1009_v51, %v1065_v7  ;;  %v1082_v28 = vsel %vm1808_vm7, %v1044_v53, %v1074_v41  ;;  %v2084_v19 = vld [vmem:[#allocation5_spill] sm:$0xff] }
 0x209   : > { %v1080_v2 = vsel %vm1808_vm7, %v1036_v33, %v1072_v11  ;;  %v1057_v13 = vadd.f32 %v1369_v20, %v1898_v16  ;;  %v1081_v60 = vsel %vm1808_vm7, %v1041_v0, %v1073_v8  ;;  %v1090_v61 = vmax.f32 %v1082_v28, 0.0  ;;  %v2083_v11 = vld [vmem:[#allocation7_spill] sm:$0xff] }
 0x20a   : > { %v1088_v25 = vmax.f32 %v1080_v2, 0.0  ;;  %v1048_v39 = vpop.f32.mrf.mxu1  ;;  %v1089_v31 = vmax.f32 %v1081_v60, 0.0  ;;  %v1163_v20 = vrot.slane %v2084_v19, %v2083_v11  ;;  %v2085_v2 = vld [vmem:[#allocation6_spill] sm:$0xff] }
 0x20b   : > { %v1085_v42 = vsel %vm1808_vm7, %v1057_v13, %v1077_v36  ;;  %v1049_v16 = vadd.f32 %v1048_v39, %v1914_v27  ;;  %v1075_v27 = vsel %vm1804_vm6, %v1017_v37, %v1067_v40  ;;  %v1098_v12 = vmin.f32 %v1090_v61, 1.0 }
 0x20c   : > { %v1096_v47 = vmin.f32 %v1088_v25, 1.0  ;;  %v1370_v15 = vpop.f32.mrf.mxu1  ;;  %v1093_v56 = vmax.f32 %v1085_v42, 0.0  ;;  %v1097_v35 = vmin.f32 %v1089_v31, 1.0  ;;  %vm1164_vm10 = vcmp.eq.s32.totalorder %v2085_v2, %v1163_v20 }
 0x20d   : > { %v1060_v58 = vadd.f32 %v1370_v15, %v2079_v55  ;;  %v1083_v1 = vsel %vm1808_vm7, %v1049_v16, %v1075_v27 }
 0x20e   : > { %v1051_v59 = vpop.f32.mrf.mxu1  ;;  %v1104_v62 = vpack.c.bf16 %v1096_v47, %v1095_v24  ;;  %v1101_v32 = vmin.f32 %v1093_v56, 1.0  ;;  %v1091_v9 = vmax.f32 %v1083_v1, 0.0  ;;  %v1105_v18 = vpack.c.bf16 %v1098_v12, %v1097_v35 }
 0x20f   : > { %v1086_v4 = vsel %vm1808_vm7, %v1060_v58, %v1078_v45  ;;  %v1052_v6 = vadd.f32 %v1051_v59, %v2081_v5 }
 0x210   : > { %v1094_v54 = vmax.f32 %v1086_v4, 0.0  ;;  %v1099_v10 = vmin.f32 %v1091_v9, 1.0 }
 0x211   : > { %v1084_v26 = vsel %vm1808_vm7, %v1052_v6, %v1076_v57 }
 0x212   : > { %v1102_v17 = vmin.f32 %v1094_v54, 1.0  ;;  %v1092_v3 = vmax.f32 %v1084_v26, 0.0 }
 0x214   : > { %v1100_v29 = vmin.f32 %v1092_v3, 1.0  ;;  %v1107_v30 = vpack.c.bf16 %v1102_v17, %v1101_v32 }
 0x216   : > { %1372 = vmatpush3.bf16.msra.mxu0 %v1107_v30  ;;  %v1106_v33 = vpack.c.bf16 %v1100_v29, %v1099_v10 }
 0x217   : > { %1373 = vmatprep.subr.bf16.mxu0 %v2082_v21 }
 0x21a   : > { %1374 = vmatpush3.bf16.msra.mxu0 %v1106_v33 }
 0x21b   : > { %1375 = vmatprep.subr.bf16.mxu0 %v2082_v21 }
 0x21e   : > { %1376 = vmatpush3.bf16.msra.mxu0 %v1105_v18 }
 0x21f   : > { %1377 = vmatprep.subr.bf16.mxu0 %v2082_v21 }
 0x222   : > { %1378 = vmatpush3.bf16.msra.mxu0 %v1104_v62 }
 0x225   : > { %1380 = vmatmul.mubr.msk.bf16.vlgmr.msra.gmra.mxu0 %vm1114_vm9, %v1103_v22 }
 0x2e5   : > { %v1152_v34 = vpop.f32.mrf.mxu0 }
 0x2e6   : > { %v1153_v13 = vadd.f32 %v1152_v34, %v1112_v14 }
 0x2e7   : > { %v1381_v36 = vpop.f32.mrf.mxu0 }
 0x2e8   : > { %v1165_v37 = vsel %vm1164_vm10, %v1153_v13, 0.0 }
 0x2e9   : > { %v1167_v38 = vsel %vm1166_vm11, %v1165_v37, 0.0  ;;  %v1155_v25 = vpop.f32.mrf.mxu0 }
 0x2ea   : > { %v1168_v39 = vrot.slane %v1167_v38, 4 }
 0x2eb   : > { %v1382_v40 = vpop.f32.mrf.mxu0 }
 0x2ec   : > { %v1169_v23 = vadd.f32 %v1168_v39, %v1167_v38 }
 0x2ee   : > { %v1170_v42 = vrot.slane %v1169_v23, 2 }
 0x2f0   : > { %v1171_v16 = vadd.f32 %v1170_v42, %v1169_v23 }
 0x2f2   : > { %v1172_v43 = vrot.slane %v1171_v16, 1 }
 0x2f4   : > { %v1173_v44 = vadd.f32 %v1172_v43, %v1171_v16 }
 0x2f6   : > { %1175 = vst.msk [vmem:[%s311_s18] sm:$0x1] %vm1174_vm12, %v1173_v44 }
 0x2f7   : > { %1471 = shalt.err (!%p1468_p4)
}
 0x2f8   : > { %s1472_s26 = scalar_lea.hbm %s1187_s22, 16  ;;  %s1476_s13 = scalar_lea.hbm %s2051_s8, 32 }
 0x2f9   : > { %p1473_p7 = scmp.ne.s32.totalorder %s1187_s22, %s1472_s26  ;;  %p1477_p10 = scmp.lt.s32.totalorder %s1187_s22, %s2051_s8 }
 0x2fa   : > { %p1478_p11 = scmp.lt.s32.totalorder %s1476_s13, %s1472_s26 }
 0x2fb   : > { %p1474_p8 = pnand %p1473_p7, %p1607_p5 }
 0x2fc   : > { %p1479_p12 = por %p1478_p11, %p1477_p10 }
 0x2fd   : > { %p1475_p9 = pneg %p1474_p8 }
 0x2ff   : > { %p1480_p13 = pnand %p1479_p12, %p1475_p9 }
 0x301   : > { %1483 = shalt.err (!%p1480_p13)
}
 0x302   : > { %1383 = dma.vmem_to_hbm [thread:$0]  (%p1607_p5), %s1190_s19, 16, %s1187_s22, %s1177_s17  }
 0x303 PF: > { %p1389_p0 = scmp.ge.s32.totalorder %s1518_s30, 2  ;;  %s1201_s21 = sand.u32 1, %s1506_s27  }
 0x304   : > { %s1202_s23 = scalar_lea.sflag [#allocation3], %s1201_s21 }
 0x305   : > { %p1386_p1 = pnand %p1389_p0, %p1611_p6 }
 0x307   : > { %p1387_p2 = pneg %p1386_p1 }
 0x309   : > { %1501 = dma.done.wait (%p1387_p2), %s1202_s23, 16  }
 0x30a   : > { %1503 = vsyncadd (%p1387_p2), %s1202_s23, 4294967280  ;;  %p18_p3 = scmp.ge.s32.totalorder %s1594_s11, 4   ;;  %s2086_s27 = smov %s1510_s28 }
 0x30b   : > { %s2087_s28 = smov %s1514_s29  ;;  %s2088_s29 = smov %s1605_s14 }
 0x30c   : > { %s2089_s30 = smov %s1594_s11  ;;  %20 = sbr.rel (!%p18_p3) target bundleno = 3 (0x3), region = 90 }
 0x311   :  { %1206 = vsyncpa [#allocation3], 1 }
 0x312   :  { %1208 = vsyncpa [#allocation3 + $0x1], 1 }

</bundles_post_ra>
